<compile_context>
chip_gen: v7x
topology: tpu7x:2x2x1
jax: 0.10.0
libtpu: 0.0.40
codegen_flags: <defaults>
</compile_context>

<pallas_src>
import functools

import jax
import jax.numpy as jnp
import numpy as np
from jax import lax
from jax.experimental import pallas as pl
from jax.experimental.pallas import tpu as pltpu

TEMPERATURE = 0.05
INV_TEMPERATURE = 1.0 / TEMPERATURE      # fold the divide into a multiply
NORM_EPS_SQ = 1e-24                      # (F.normalize eps=1e-12)**2, clamp on sum-of-squares


def _l2_normalize(x):
    # F.normalize(p=2, dim=1): x / max(||x||, eps)  ==  x * rsqrt(max(||x||^2, eps^2))
    ssq = jnp.sum(x * x, axis=1, keepdims=True)
    return x * lax.rsqrt(jnp.maximum(ssq, jnp.float32(NORM_EPS_SQ)))


def _attfeats_tile_kernel(i_idx_ref, j_idx_ref,                 # scalar prefetch (SMEM)
                          lhs_ref, rhs_ref, lab_i_ref, lab_j_ref,  # inputs (VMEM)
                          out_dist_ref, out_dmask_ref):          # outputs (VMEM)
    p = pl.program_id(0)

    # Fused matmul: lhs = [f | a], rhs = [f | -a]  =>  lhs @ rhs.T == f@f.T - a@a.T.
    diff = lax.dot_general(lhs_ref[...], rhs_ref[...],
                           dimension_numbers=(((1,), (1,)), ((), ())),
                           preferred_element_type=jnp.float32)
    dist = jnp.exp(jnp.abs(diff) * INV_TEMPERATURE)              # (tb, tb) f32

    # Symmetry weight: strict-upper-triangle tiles stand in for their mirror tile.
    w = jnp.where(i_idx_ref[p] == j_idx_ref[p], 1.0, 2.0).astype(jnp.float32)
    wd = dist * w

    mask = lab_i_ref[...] == lab_j_ref[...]                      # (tb, tb) bool, stays bool

    # Lane-dense per-step partial sums (sublane reduce only); cross-lane reduce + log
    # happen once, in the wrapper.  No carried scratch => grid axis can be "parallel".
    out_dist_ref[...] = jnp.sum(wd, axis=0, keepdims=True)
    out_dmask_ref[...] = jnp.sum(jnp.where(mask, wd, 0.0), axis=0, keepdims=True)


def _pick_tile_b(batch):
    # Largest divisor of B that is <= 256 so tiles stay bounded on v7x (64 MiB VMEM/TC)
    # while keeping per-grid-step overhead amortized on v5e/v6e.
    for t in (256, 128, 64, 32, 16, 8):
        if batch % t == 0:
            return t
    # TODO(synk): pad ragged batch sizes to a multiple of 8 instead of one whole-batch tile.
    return batch


@functools.partial(jax.jit, static_argnames=("compute_dtype",))
def attfeats_con_loss(features, att, labels, *, compute_dtype=jnp.float32):
    batch, feat_dim = features.shape
    att_dim = att.shape[1]
    d_total = feat_dim + att_dim

    tile_b = _pick_tile_b(batch)
    n_tiles = batch // tile_b

    # Hoisted normalization + fused-matmul operand construction (done once, not per tile).
    f = _l2_normalize(features.astype(jnp.float32))
    a = _l2_normalize(att.astype(jnp.float32))
    lhs = jnp.concatenate([f, a], axis=1).astype(compute_dtype)   # (B, d_total)
    rhs = jnp.concatenate([f, -a], axis=1).astype(compute_dtype)  # (B, d_total)

    lab_col = labels.reshape(batch, 1).astype(jnp.int32)
    lab_row = labels.reshape(1, batch).astype(jnp.int32)

    # Upper-triangle (incl. diagonal) tile-pair schedule, prefetched to SMEM.
    tri = [(i, j) for i in range(n_tiles) for j in range(i, n_tiles)]
    n_pairs = len(tri)
    i_idx = jnp.asarray(np.array([t[0] for t in tri], dtype=np.int32))
    j_idx = jnp.asarray(np.array([t[1] for t in tri], dtype=np.int32))

    grid_spec = pltpu.PrefetchScalarGridSpec(
        num_scalar_prefetch=2,
        grid=(n_pairs,),
        in_specs=[
            pl.BlockSpec((tile_b, d_total), lambda p, ii, jj: (ii[p], 0)),  # lhs row tile
            pl.BlockSpec((tile_b, d_total), lambda p, ii, jj: (jj[p], 0)),  # rhs col tile
            pl.BlockSpec((tile_b, 1), lambda p, ii, jj: (ii[p], 0)),        # labels (col form)
            pl.BlockSpec((1, tile_b), lambda p, ii, jj: (0, jj[p])),        # labels (row form)
        ],
        out_specs=(
            pl.BlockSpec((1, tile_b), lambda p, ii, jj: (p, 0)),            # partial sum(dist)
            pl.BlockSpec((1, tile_b), lambda p, ii, jj: (p, 0)),            # partial sum(dist*mask)
        ),
    )

    part_dist, part_dmask = pl.pallas_call(
        _attfeats_tile_kernel,
        out_shape=(jax.ShapeDtypeStruct((n_pairs, tile_b), jnp.float32),
                   jax.ShapeDtypeStruct((n_pairs, tile_b), jnp.float32)),
        grid_spec=grid_spec,
        compiler_params=pltpu.CompilerParams(
            dimension_semantics=("parallel",),          # each pair independent; uses both v7x TCs
            vmem_limit_bytes=48 * 1024 * 1024),         # headroom beyond v5e's 16 MiB default
    )(i_idx, j_idx, lhs, rhs, lab_col, lab_row)

    # --- tiny final combine in plain JAX (exact, O(B) / O(n_pairs) work) -------------
    sum_dist = jnp.sum(part_dist)       # sum over full B x B dist matrix (via symmetry weights)
    sum_dmask = jnp.sum(part_dmask)     # sum over same-label pairs (incl. diagonal)

    bf = jnp.float32(batch)
    sum_mask = jnp.sum((labels[:, None] == labels[None, :]).astype(jnp.float32))

    # Exact diagonal removal: diag(f@f.T - a@a.T) == sum(lhs * rhs, axis=1).
    diag_diff = jnp.sum(lhs.astype(jnp.float32) * rhs.astype(jnp.float32), axis=1)
    diag_dist = jnp.sum(jnp.exp(jnp.abs(diag_diff) * INV_TEMPERATURE))

    pos = (sum_dmask - diag_dist) / (sum_mask - bf + 1e-6)
    neg = (sum_dist - sum_dmask) / (bf * bf - sum_mask + 1e-6)
    return -jnp.log(pos / (pos + neg))


def reference_loss(features, att, labels):
    """Pure-JAX reference mirroring the PyTorch forward."""
    def l2norm(x):
        n = jnp.sqrt(jnp.sum(x * x, axis=1, keepdims=True))
        return x / jnp.maximum(n, 1e-12)

    f = l2norm(features)
    a = l2norm(att)
    mask = (labels[:, None] == labels[None, :]).astype(jnp.float32)
    eye = jnp.eye(labels.shape[0], dtype=jnp.float32)
    mask_pos = mask * (1.0 - eye)
    mask_neg = 1.0 - mask
    dist = jnp.exp(jnp.abs(f @ f.T - a @ a.T) / TEMPERATURE)
    pos = jnp.sum(dist * mask_pos) / (jnp.sum(mask_pos) + 1e-6)
    neg = jnp.sum(dist * mask_neg) / (jnp.sum(mask_neg) + 1e-6)
    return -jnp.log(pos / (pos + neg))


if __name__ == "__main__":
    B, FEAT_DIM, ATT_DIM, NUM_CLASSES = 8, 32, 16, 10

    key = jax.random.PRNGKey(0)
    k_feat, k_table, k_noise = jax.random.split(key, 3)

    # Inputs / "parameters" (deterministic; att_table stands in for fasttext.npy).
    features = jax.random.normal(k_feat, (B, FEAT_DIM), jnp.float32)
    att_table = jax.random.normal(k_table, (NUM_CLASSES, ATT_DIM), jnp.float32)
    # Fixed labels with repeats so mask_pos is non-empty (loss stays finite).
    labels = jnp.array([0, 1, 2, 0, 1, 3, 2, 4], dtype=jnp.int32)
    # TODO(synk): PyTorch draws fresh CUDA normal noise each call; here it is a
    # deterministic jax.random draw for reproducibility.
    noise = jax.random.normal(k_noise, (B, ATT_DIM), jnp.float32)

    # Glue: embedding gather + concat (matches torch.cat((noise, att[labels]), 1)).
    att_sel = att_table[labels]                             # (B, ATT_DIM)
    att_cat = jnp.concatenate([noise, att_sel], axis=1)     # (B, 2*ATT_DIM)

    # f32 path: validated tightly against the reference.
    loss = attfeats_con_loss(features, att_cat, labels)
    jax.block_until_ready(loss)

    ref = reference_loss(features, att_cat, labels)
    np.testing.assert_allclose(np.asarray(loss), np.asarray(ref), rtol=2e-3, atol=1e-5)

    # bf16-operand path (production MXU-rate option): smoke test only — exp amplifies
    # bf16 operand error, so it is not held to the f32 tolerance.
    loss_bf16 = attfeats_con_loss(features, att_cat, labels, compute_dtype=jnp.bfloat16)
    jax.block_until_ready(loss_bf16)
    assert np.isfinite(np.asarray(loss_bf16)), "bf16 path produced non-finite loss"

    print("KERNEL_OK")
</pallas_src>

<mosaic_0001>
module attributes {stable_mosaic.version = 11 : i64} {
  func.func @_attfeats_tile_kernel(%arg0: i32, %arg1: memref<1xi32, #tpu.memory_space<smem>>, %arg2: memref<1xi32, #tpu.memory_space<smem>>, %arg3: memref<8x64xf32, #tpu.memory_space<vmem>>, %arg4: memref<8x64xf32, #tpu.memory_space<vmem>>, %arg5: memref<8x1xi32, #tpu.memory_space<vmem>>, %arg6: memref<1x8xi32, #tpu.memory_space<vmem>>, %arg7: memref<1x8xf32, #tpu.memory_space<vmem>>, %arg8: memref<1x8xf32, #tpu.memory_space<vmem>>) attributes {dimension_semantics = [#tpu.dimension_semantics<parallel>], iteration_bounds = array<i64: 1>, scalar_prefetch = 2 : i64, scratch_operands = 0 : i64, tpu.core_type = #tpu.core_type<tc>, window_params = [{transform_indices = @transform_0, window_bounds = array<i64: 8, 64>}, {transform_indices = @transform_1, window_bounds = array<i64: 8, 64>}, {transform_indices = @transform_2, window_bounds = array<i64: 8, 1>}, {transform_indices = @transform_3, window_bounds = array<i64: 1, 8>}, {transform_indices = @transform_4, window_bounds = array<i64: 1, 8>}, {transform_indices = @transform_5, window_bounds = array<i64: 1, 8>}]} {
    %c0 = arith.constant 0 : index
    %c0_0 = arith.constant 0 : index
    %0 = vector.load %arg3[%c0, %c0_0] : memref<8x64xf32, #tpu.memory_space<vmem>>, vector<8x64xf32>
    %c0_1 = arith.constant 0 : index
    %c0_2 = arith.constant 0 : index
    %1 = vector.load %arg4[%c0_1, %c0_2] : memref<8x64xf32, #tpu.memory_space<vmem>>, vector<8x64xf32>
    %cst = arith.constant dense<0.000000e+00> : vector<8x8xf32>
    %2 = tpu.matmul %0, %1, %cst {dimension_numbers = #tpu.dot_dimension_numbers<[1], [1], [0], [0], [0, 0, 1, 0], [], []>} : vector<8x64xf32>, vector<8x64xf32>, vector<8x8xf32> -> vector<8x8xf32>
    %3 = math.absf %2 : vector<8x8xf32>
    %cst_3 = arith.constant 2.000000e+01 : f32
    %4 = vector.broadcast %cst_3 : f32 to vector<8x8xf32>
    %5 = arith.mulf %3, %4 : vector<8x8xf32>
    %6 = math.exp %5 : vector<8x8xf32>
    %7 = arith.index_cast %arg0 : i32 to index
    %8 = memref.load %arg1[%7] : memref<1xi32, #tpu.memory_space<smem>>
    %9 = arith.index_cast %arg0 : i32 to index
    %10 = memref.load %arg2[%9] : memref<1xi32, #tpu.memory_space<smem>>
    %11 = arith.cmpi eq, %8, %10 : i32
    %cst_4 = arith.constant 1.000000e+00 : f32
    %cst_5 = arith.constant 2.000000e+00 : f32
    %12 = arith.select %11, %cst_4, %cst_5 : f32
    %13 = vector.broadcast %12 : f32 to vector<8x8xf32>
    %14 = arith.mulf %6, %13 : vector<8x8xf32>
    %c0_6 = arith.constant 0 : index
    %c0_7 = arith.constant 0 : index
    %15 = vector.load %arg5[%c0_6, %c0_7] : memref<8x1xi32, #tpu.memory_space<vmem>>, vector<8x1xi32>
    %c0_8 = arith.constant 0 : index
    %c0_9 = arith.constant 0 : index
    %16 = vector.load %arg6[%c0_8, %c0_9] : memref<1x8xi32, #tpu.memory_space<vmem>>, vector<1x8xi32>
    %17 = vector.broadcast %15 : vector<8x1xi32> to vector<8x8xi32>
    %18 = vector.broadcast %16 : vector<1x8xi32> to vector<8x8xi32>
    %19 = arith.cmpi eq, %17, %18 : vector<8x8xi32>
    %cst_10 = arith.constant dense<0.000000e+00> : vector<8xf32>
    %20 = vector.multi_reduction <add>, %14, %cst_10 [0] : vector<8x8xf32> to vector<8xf32>
    %21 = vector.shape_cast %20 : vector<8xf32> to vector<1x8xf32>
    %c0_11 = arith.constant 0 : index
    %c0_12 = arith.constant 0 : index
    %22 = vector.load %arg7[%c0_11, %c0_12] : memref<1x8xf32, #tpu.memory_space<vmem>>, vector<1x8xf32>
    tpu.vector_store %arg7[%c0_11, %c0_12], %21 {strides = array<i32>} : memref<1x8xf32, #tpu.memory_space<vmem>>, vector<1x8xf32>,
    %cst_13 = arith.constant 0.000000e+00 : f32
    %23 = vector.broadcast %cst_13 : f32 to vector<8x8xf32>
    %24 = arith.select %19, %14, %23 : vector<8x8xi1>, vector<8x8xf32>
    %cst_14 = arith.constant dense<0.000000e+00> : vector<8xf32>
    %25 = vector.multi_reduction <add>, %24, %cst_14 [0] : vector<8x8xf32> to vector<8xf32>
    %26 = vector.shape_cast %25 : vector<8xf32> to vector<1x8xf32>
    %c0_15 = arith.constant 0 : index
    %c0_16 = arith.constant 0 : index
    %27 = vector.load %arg8[%c0_15, %c0_16] : memref<1x8xf32, #tpu.memory_space<vmem>>, vector<1x8xf32>
    tpu.vector_store %arg8[%c0_15, %c0_16], %26 {strides = array<i32>} : memref<1x8xf32, #tpu.memory_space<vmem>>, vector<1x8xf32>,
    return
  }
  func.func @transform_0(%arg0: i32, %arg1: memref<1xi32, #tpu.memory_space<smem>>, %arg2: memref<1xi32, #tpu.memory_space<smem>>) -> (i32, i32) {
    %0 = arith.index_cast %arg0 : i32 to index
    %1 = memref.load %arg1[%0] : memref<1xi32, #tpu.memory_space<smem>>
    %c0_i32 = arith.constant 0 : i32
    %c0_i32_0 = arith.constant 0 : i32
    return %1, %c0_i32 : i32, i32
  }
  func.func @transform_1(%arg0: i32, %arg1: memref<1xi32, #tpu.memory_space<smem>>, %arg2: memref<1xi32, #tpu.memory_space<smem>>) -> (i32, i32) {
    %0 = arith.index_cast %arg0 : i32 to index
    %1 = memref.load %arg2[%0] : memref<1xi32, #tpu.memory_space<smem>>
    %c0_i32 = arith.constant 0 : i32
    %c0_i32_0 = arith.constant 0 : i32
    return %1, %c0_i32 : i32, i32
  }
  func.func @transform_2(%arg0: i32, %arg1: memref<1xi32, #tpu.memory_space<smem>>, %arg2: memref<1xi32, #tpu.memory_space<smem>>) -> (i32, i32) {
    %0 = arith.index_cast %arg0 : i32 to index
    %1 = memref.load %arg1[%0] : memref<1xi32, #tpu.memory_space<smem>>
    %c0_i32 = arith.constant 0 : i32
    %c0_i32_0 = arith.constant 0 : i32
    return %1, %c0_i32 : i32, i32
  }
  func.func @transform_3(%arg0: i32, %arg1: memref<1xi32, #tpu.memory_space<smem>>, %arg2: memref<1xi32, #tpu.memory_space<smem>>) -> (i32, i32) {
    %0 = arith.index_cast %arg0 : i32 to index
    %1 = memref.load %arg2[%0] : memref<1xi32, #tpu.memory_space<smem>>
    %c0_i32 = arith.constant 0 : i32
    %c0_i32_0 = arith.constant 0 : i32
    return %c0_i32, %1 : i32, i32
  }
  func.func @transform_4(%arg0: i32, %arg1: memref<1xi32, #tpu.memory_space<smem>>, %arg2: memref<1xi32, #tpu.memory_space<smem>>) -> (i32, i32) {
    %c0_i32 = arith.constant 0 : i32
    %c0_i32_0 = arith.constant 0 : i32
    return %arg0, %c0_i32 : i32, i32
  }
  func.func @transform_5(%arg0: i32, %arg1: memref<1xi32, #tpu.memory_space<smem>>, %arg2: memref<1xi32, #tpu.memory_space<smem>>) -> (i32, i32) {
    %c0_i32 = arith.constant 0 : i32
    %c0_i32_0 = arith.constant 0 : i32
    return %arg0, %c0_i32 : i32, i32
  }
}

</mosaic_0001>

<bundles_post_ra>
// kernel: attfeats_con_loss.1
= control target key start
LH: loop header
LB: loop body
LE: loop exit
PB: predicated region body
PF: predicated region fallthrough
CT: control target
= control target key end

     0   :  { %v254_v0 = vmov 0.0   ;;  %vm255_vm0 = vmmov 0   ;;  %v256_v1 = vmov 0   ;;  %vm90_vm1 = vcmask 523264   ;;  %s333_s1 = inlined_call_operand.<no memory space> [shape: s32[1], index: 1, kind: input, shape index: {}, may-alias: {0,1}]   ;;  %s334_s0 = inlined_call_operand.<no memory space> [shape: s32[1], index: 0, kind: input, shape index: {}, may-alias: {0,1}]   ;;  %s335_s3 = inlined_call_operand.vmem [shape: f32[8,64], index: 3, kind: input, shape index: {}]   ;;  %s336_s2 = inlined_call_operand.vmem [shape: f32[8,64], index: 2, kind: input, shape index: {}]   ;;  %s337_s4 = inlined_call_operand.vmem [shape: s32[8,1], index: 4, kind: input, shape index: {}]   ;;  %s338_s5 = inlined_call_operand.vmem [shape: s32[1,8], index: 5, kind: input, shape index: {}]   ;;  %s339_s6 = inlined_call_operand.vmem [shape: f32[1,8], index: 6, kind: output, shape index: {0}]   ;;  %s340_s7 = inlined_call_operand.vmem [shape: f32[1,8], index: 7, kind: output, shape index: {1}]  }
   0x1   :  { %243 = vmatprep.subr.mxu0 %v254_v0  ;;  %p72_p0 = scmp.lt.s32.totalorder %s333_s1, 0  ;;  %245 = vmatprep.mubr.msk.f32.mxu0 %vm255_vm0, %v254_v0  ;;  %p66_p1 = scmp.lt.s32.totalorder %s334_s0, 0  ;;  %vm187_vm2 = vcmask 64512   ;;  %vm195_vm4 = vcmask 57344  }
   0x2   :  { %251 = vset.pattern.permute.xlu0 %v256_v1  ;;  %p173_p2 = scmp.eq.s32.totalorder %s334_s0, %s333_s1 }
   0x3   :  { %s73_s30 = scalar_select %p72_p0, %s333_s1, 0 }
   0x4   :  { %s67_s10 = scalar_select %p66_p1, %s334_s0, 0 }
   0x5   :  { %s236_s11 = sshll.u32 %s73_s30, 3  ;;  %s86_s25 = scalar_lea.vmem %s338_s5, %s73_s30 }
   0x6   :  { %s75_s14 = scalar_lea.vmem %s335_s3, %s236_s11  ;;  %s235_s15 = sshll.u32 %s67_s10, 3  ;;  %v240_v10 = vld [vmem:[%s86_s25] ss:$0 sm:$0xff] }
   0x7   :  { %v89_v2 = vld [vmem:[%s75_s14] sm:$0xff]  ;;  %s69_s18 = scalar_lea.vmem %s336_s2, %s235_s15  ;;  %s81_s21 = scalar_lea.vmem %s337_s4, %s235_s15 }
   0x8   :  { %244 = vmatpush3.xpose.msk.msra.mxu0 %vm90_vm1, %v89_v2  ;;  %v88_v3 = vld [vmem:[%s69_s18] sm:$0xff]  ;;  %s174_s26 = scalar_select %p173_p2, 1.0, 2.0 }
   0x9   :  { %v177_v4 = vld [vmem:[%s81_s21] sm:$0xff] }
   0xa   :  { %180 = vperm.xlu0 %251, %v177_v4   ;;  %v175_v12 = vstv %s174_s26 }
   0xb   :  { %246 = vmatmul.mubr.msk.f32.vlgmr.msra.gmra.mrb[0].mxu0 %vm90_vm1, %v88_v3 }
  0x89   :  { %v181_v11 = vpop.permute.xlu0 %180 }
  0x8a   :  { %vm186_vm3 = vcmp.eq.s32.totalorder %v181_v11, %v240_v10 }
  0xde   :  { %v163_v5 = vpop.f32.mrb[0].mxu0 }
  0xdf   :  { %v167_v6 = vand.u32 2147483647, %v163_v5  ;;  %v247_v7 = vpop.f32.mrb[1].mxu0 }
  0xe1   :  { %v168_v8 = vmul.f32 20.0, %v167_v6 }
  0xe3   :  { %v169_v9 = vmul.f32 1.442695, %v168_v8 }
  0xe5   :  { %252 = vpow2.f32 %v169_v9 }
  0xef   :  { %v253_v13 = vpop.eup %252 }
  0xf0   :  { %v176_v14 = vmul.f32 %v253_v13, %v175_v12 }
  0xf2   :  { %v188_v15 = vsel %vm187_vm2, %v176_v14, 0.0  ;;  %v197_v16 = vsel %vm186_vm3, %v176_v14, 0.0 }
  0xf3   :  { %v189_v17 = vrot.slane %v188_v15, 4  ;;  %v198_v18 = vsel %vm187_vm2, %v197_v16, 0.0 }
  0xf4   :  { %v199_v19 = vrot.slane %v198_v18, 4 }
  0xf5   :  { %v190_v20 = vadd.f32 %v189_v17, %v188_v15 }
  0xf6   :  { %v200_v21 = vadd.f32 %v199_v19, %v198_v18 }
  0xf7   :  { %v191_v22 = vrot.slane %v190_v20, 2 }
  0xf8   :  { %v201_v23 = vrot.slane %v200_v21, 2 }
  0xf9   :  { %v192_v24 = vadd.f32 %v191_v22, %v190_v20 }
  0xfa   :  { %v202_v25 = vadd.f32 %v201_v23, %v200_v21 }
  0xfb   :  { %v193_v26 = vrot.slane %v192_v24, 1 }
  0xfc   :  { %v203_v27 = vrot.slane %v202_v25, 1 }
  0xfd   :  { %v194_v28 = vadd.f32 %v193_v26, %v192_v24 }
  0xfe   :  { %v204_v29 = vadd.f32 %v203_v27, %v202_v25 }
  0xff   :  { %196 = vst.msk [vmem:[%s339_s6] sm:$0x1] %vm195_vm4, %v194_v28 }
 0x100   :  { %205 = vst.msk [vmem:[%s340_s7] sm:$0x1] %vm195_vm4, %v204_v29 }

</bundles_post_ra>
